<compile_context>
chip_gen: v7x
topology: tpu7x:2x2x1
jax: 0.10.0
libtpu: 0.0.40
codegen_flags: <defaults>
</compile_context>

<pallas_src>
import functools

import jax
import jax.numpy as jnp
from jax.experimental import pallas as pl
from jax.experimental.pallas import tpu as pltpu


def _round_up(x: int, m: int) -> int:
    return ((x + m - 1) // m) * m


def _cdiv(a: int, b: int) -> int:
    return (a + b - 1) // b


def _pack_constants(all_params):
    """Pack (w [f_out, f_in], b [f_out]) pairs into one [R, 128] f32 array.

    Each layer occupies rows [off, off + round_up(f_out, 8)); columns
    [0, f_in) hold W and column f_in holds the bias.  Returns (consts, meta)
    with meta[i] = (row_offset, f_out, f_in) (static Python ints).
    """
    blocks, meta, off = [], [], 0
    for w, b in all_params:
        f_out, f_in = w.shape
        rows = _round_up(f_out, 8)
        blk = jnp.zeros((rows, 128), jnp.float32)
        blk = blk.at[:f_out, :f_in].set(w.astype(jnp.float32))
        blk = blk.at[:f_out, f_in].set(b.reshape(f_out).astype(jnp.float32))
        blocks.append(blk)
        meta.append((off, f_out, f_in))
        off += rows
    return jnp.concatenate(blocks, axis=0), tuple(meta)


def _deeponet_kernel(bx_ref, tx_ref, c_ref, o_ref, *, branch_meta, trunk_meta):
    """Fused DeepONet forward on one [*, TN] batch tile (batch on lanes)."""

    def dense_layer(h, layer, last):
        off, f_out, f_in = layer
        # Tile-aligned load (off, f_out multiples of 8; full 128 lanes), then
        # slice weight / bias out of the loaded value (in-register, static).
        blk = c_ref[off:off + f_out, :]               # [f_out, 128]
        w = blk[:, :f_in]                             # [f_out, f_in]
        b = blk[:, f_in:f_in + 1]                     # [f_out, 1] lane-bcast
        if f_in <= 4:
            # Tiny contraction dim (trunk first layer, K=2): VPU broadcast
            # multiply-adds beat staging a 2-row weight into the MXU.
            h_new = b
            for k in range(f_in):
                h_new = h_new + w[:, k:k + 1] * h[k:k + 1, :]
        else:
            h_new = jnp.dot(w, h, preferred_element_type=jnp.float32) + b
        return h_new if last else jnp.tanh(h_new)

    h_b = bx_ref[...].astype(jnp.float32)             # [branch_in, TN]
    for i, layer in enumerate(branch_meta):
        h_b = dense_layer(h_b, layer, i == len(branch_meta) - 1)

    h_t = tx_ref[...].astype(jnp.float32)             # [2, TN]
    for i, layer in enumerate(trunk_meta):
        h_t = dense_layer(h_t, layer, i == len(trunk_meta) - 1)

    # Feature reduce over sublanes -> lane-dense [1, TN] row, full-width store.
    o_ref[...] = jnp.sum(h_b * h_t, axis=0, keepdims=True).astype(o_ref.dtype)


def deeponet_forward(x, branch_params, trunk_params, *, block_cols: int = 4096):
    """x: [N, branch_in + 2] -> [N]; fused branch/trunk DeepONet forward."""
    n, d = x.shape
    branch_in = d - 2
    assert branch_params[0][0].shape[1] == branch_in
    assert trunk_params[0][0].shape[1] == 2
    # DeepONet requires matching output widths for the final inner product.
    assert branch_params[-1][0].shape[0] == trunk_params[-1][0].shape[0]

    # Batch tile on the LANE axis (multiple of 128). Big tiles amortize the
    # ~0.35us/step grid overhead; VMEM is nowhere near binding here.
    block_cols = max(128, _round_up(block_cols, 128))
    n_pad128 = _round_up(max(n, 1), 128)
    tn = min(block_cols, n_pad128)
    # Guarantee >= 2 grid steps when the batch spans >= 2 lane tiles so the
    # "parallel" axis can feed both v7x TensorCores (no-op on v5e/v6e).
    if _cdiv(n_pad128, tn) < 2 and n_pad128 >= 256:
        tn = _round_up(_cdiv(n_pad128, 2), 128)
    n_pad = _round_up(n_pad128, tn)
    grid = (n_pad // tn,)

    # Transpose + split once in the wrapper: batch goes onto lanes, and the
    # kernel never does a non-lane-aligned slice of the x tile.
    x_t = x.astype(jnp.float32).T                      # [d, n]
    if n_pad != n:
        x_t = jnp.pad(x_t, ((0, 0), (0, n_pad - n)))
    bx = x_t[:branch_in, :]                            # [branch_in, n_pad]
    tx = x_t[branch_in:, :]                            # [2, n_pad]

    consts, meta = _pack_constants(list(branch_params) + list(trunk_params))
    n_branch = len(branch_params)
    branch_meta, trunk_meta = meta[:n_branch], meta[n_branch:]

    kernel = functools.partial(
        _deeponet_kernel, branch_meta=branch_meta, trunk_meta=trunk_meta)

    out = pl.pallas_call(
        kernel,
        out_shape=jax.ShapeDtypeStruct((1, n_pad), x.dtype),
        grid=grid,
        in_specs=[
            pl.BlockSpec((branch_in, tn), lambda i: (0, i)),
            pl.BlockSpec((2, tn), lambda i: (0, i)),
            pl.BlockSpec(consts.shape, lambda i: (0, 0)),   # VMEM-resident
        ],
        out_specs=pl.BlockSpec((1, tn), lambda i: (0, i)),   # lane-dense vst
        compiler_params=pltpu.CompilerParams(
            dimension_semantics=("parallel",),  # megacore-shardable (v7x)
        ),
    )(bx, tx, consts)

    return out[0, :n]


def init_dense_nn_params(key, layers):
    """PyTorch nn.Linear default init, PyTorch-native layout: W [out, in], b [out]."""
    params = []
    for i in range(len(layers) - 1):
        fan_in, fan_out = layers[i], layers[i + 1]
        key, kw, kb = jax.random.split(key, 3)
        bound = 1.0 / float(fan_in) ** 0.5
        w = jax.random.uniform(kw, (fan_out, fan_in), jnp.float32, -bound, bound)
        b = jax.random.uniform(kb, (fan_out,), jnp.float32, -bound, bound)
        params.append((w, b))
    return params


def _dense_nn_ref(params, h):
    for i, (w, b) in enumerate(params):
        h = h @ w.T + b
        if i < len(params) - 1:
            h = jnp.tanh(h)
    return h


def _deeponet_ref(x, branch_params, trunk_params):
    branch_x = x[:, : x.shape[1] - 2]
    trunk_x = x[:, x.shape[1] - 2:]
    bo = _dense_nn_ref(branch_params, branch_x)
    to = _dense_nn_ref(trunk_params, trunk_x)
    return jnp.sum(bo * to, axis=1)


if __name__ == "__main__":
    # DeepONet(branch_layers=[16, 32, 32, 8], trunk_layers=[2, 32, 32, 8])
    branch_layers = [16, 32, 32, 8]
    trunk_layers = [2, 32, 32, 8]
    batch = 300  # not a multiple of 128 -> exercises padding + 2 grid steps

    key = jax.random.PRNGKey(0)
    key, kb, kt, kx = jax.random.split(key, 4)
    branch_params = init_dense_nn_params(kb, branch_layers)
    trunk_params = init_dense_nn_params(kt, trunk_layers)

    x = jax.random.normal(kx, (batch, branch_layers[0] + 2), dtype=jnp.float32)

    fwd = jax.jit(deeponet_forward)
    out = jax.block_until_ready(fwd(x, branch_params, trunk_params))

    ref = _deeponet_ref(x, branch_params, trunk_params)
    assert out.shape == (batch,)
    assert jnp.allclose(out, ref, atol=1e-4, rtol=1e-4)

    print("KERNEL_OK")
</pallas_src>

<mosaic_0001>
module attributes {stable_mosaic.version = 11 : i64} {
  func.func @_deeponet_kernel(%arg0: i32, %arg1: memref<16x256xf32, #tpu.memory_space<vmem>>, %arg2: memref<2x256xf32, #tpu.memory_space<vmem>>, %arg3: memref<144x128xf32, #tpu.memory_space<vmem>>, %arg4: memref<1x256xf32, #tpu.memory_space<vmem>>) attributes {dimension_semantics = [#tpu.dimension_semantics<parallel>], iteration_bounds = array<i64: 2>, scalar_prefetch = 0 : i64, scratch_operands = 0 : i64, tpu.core_type = #tpu.core_type<tc>, window_params = [{transform_indices = @transform_0, window_bounds = array<i64: 16, 256>}, {transform_indices = @transform_1, window_bounds = array<i64: 2, 256>}, {pipeline_mode = #tpu.pipeline_mode<synchronous>, transform_indices = @transform_2, window_bounds = array<i64: 144, 128>}, {transform_indices = @transform_3, window_bounds = array<i64: 1, 256>}]} {
    %c0 = arith.constant 0 : index
    %c0_0 = arith.constant 0 : index
    %0 = vector.load %arg1[%c0, %c0_0] : memref<16x256xf32, #tpu.memory_space<vmem>>, vector<16x256xf32>
    %c0_1 = arith.constant 0 : index
    %c0_2 = arith.constant 0 : index
    %1 = vector.load %arg3[%c0_1, %c0_2] : memref<144x128xf32, #tpu.memory_space<vmem>>, vector<32x128xf32>
    %2 = vector.extract_strided_slice %1 {offsets = [0, 0], sizes = [32, 16], strides = [1, 1]} : vector<32x128xf32> to vector<32x16xf32>
    %3 = vector.extract_strided_slice %1 {offsets = [0, 16], sizes = [32, 1], strides = [1, 1]} : vector<32x128xf32> to vector<32x1xf32>
    %cst = arith.constant dense<0.000000e+00> : vector<32x256xf32>
    %4 = tpu.matmul %2, %0, %cst {dimension_numbers = #tpu.dot_dimension_numbers<[1], [0], [0], [1], [0, 0, 1, 1], [], []>} : vector<32x16xf32>, vector<16x256xf32>, vector<32x256xf32> -> vector<32x256xf32>
    %5 = vector.broadcast %3 : vector<32x1xf32> to vector<32x256xf32>
    %6 = arith.addf %4, %5 : vector<32x256xf32>
    %7 = math.tanh %6 : vector<32x256xf32>
    %c32 = arith.constant 32 : index
    %c0_3 = arith.constant 0 : index
    %8 = vector.load %arg3[%c32, %c0_3] : memref<144x128xf32, #tpu.memory_space<vmem>>, vector<32x128xf32>
    %9 = vector.extract_strided_slice %8 {offsets = [0, 0], sizes = [32, 32], strides = [1, 1]} : vector<32x128xf32> to vector<32x32xf32>
    %10 = vector.extract_strided_slice %8 {offsets = [0, 32], sizes = [32, 1], strides = [1, 1]} : vector<32x128xf32> to vector<32x1xf32>
    %cst_4 = arith.constant dense<0.000000e+00> : vector<32x256xf32>
    %11 = tpu.matmul %9, %7, %cst_4 {dimension_numbers = #tpu.dot_dimension_numbers<[1], [0], [0], [1], [0, 0, 1, 1], [], []>} : vector<32x32xf32>, vector<32x256xf32>, vector<32x256xf32> -> vector<32x256xf32>
    %12 = vector.broadcast %10 : vector<32x1xf32> to vector<32x256xf32>
    %13 = arith.addf %11, %12 : vector<32x256xf32>
    %14 = math.tanh %13 : vector<32x256xf32>
    %c64 = arith.constant 64 : index
    %c0_5 = arith.constant 0 : index
    %15 = vector.load %arg3[%c64, %c0_5] : memref<144x128xf32, #tpu.memory_space<vmem>>, vector<8x128xf32>
    %16 = vector.extract_strided_slice %15 {offsets = [0, 0], sizes = [8, 32], strides = [1, 1]} : vector<8x128xf32> to vector<8x32xf32>
    %17 = vector.extract_strided_slice %15 {offsets = [0, 32], sizes = [8, 1], strides = [1, 1]} : vector<8x128xf32> to vector<8x1xf32>
    %cst_6 = arith.constant dense<0.000000e+00> : vector<8x256xf32>
    %18 = tpu.matmul %16, %14, %cst_6 {dimension_numbers = #tpu.dot_dimension_numbers<[1], [0], [0], [1], [0, 0, 1, 1], [], []>} : vector<8x32xf32>, vector<32x256xf32>, vector<8x256xf32> -> vector<8x256xf32>
    %19 = vector.broadcast %17 : vector<8x1xf32> to vector<8x256xf32>
    %20 = arith.addf %18, %19 : vector<8x256xf32>
    %c0_7 = arith.constant 0 : index
    %c0_8 = arith.constant 0 : index
    %21 = vector.load %arg2[%c0_7, %c0_8] : memref<2x256xf32, #tpu.memory_space<vmem>>, vector<2x256xf32>
    %c72 = arith.constant 72 : index
    %c0_9 = arith.constant 0 : index
    %22 = vector.load %arg3[%c72, %c0_9] : memref<144x128xf32, #tpu.memory_space<vmem>>, vector<32x128xf32>
    %23 = vector.extract_strided_slice %22 {offsets = [0, 0], sizes = [32, 2], strides = [1, 1]} : vector<32x128xf32> to vector<32x2xf32>
    %24 = vector.extract_strided_slice %22 {offsets = [0, 2], sizes = [32, 1], strides = [1, 1]} : vector<32x128xf32> to vector<32x1xf32>
    %25 = vector.extract_strided_slice %23 {offsets = [0, 0], sizes = [32, 1], strides = [1, 1]} : vector<32x2xf32> to vector<32x1xf32>
    %26 = vector.extract_strided_slice %21 {offsets = [0, 0], sizes = [1, 256], strides = [1, 1]} : vector<2x256xf32> to vector<1x256xf32>
    %27 = vector.broadcast %25 : vector<32x1xf32> to vector<32x256xf32>
    %28 = vector.broadcast %26 : vector<1x256xf32> to vector<32x256xf32>
    %29 = arith.mulf %27, %28 : vector<32x256xf32>
    %30 = vector.broadcast %24 : vector<32x1xf32> to vector<32x256xf32>
    %31 = arith.addf %30, %29 : vector<32x256xf32>
    %32 = vector.extract_strided_slice %23 {offsets = [0, 1], sizes = [32, 1], strides = [1, 1]} : vector<32x2xf32> to vector<32x1xf32>
    %33 = vector.extract_strided_slice %21 {offsets = [1, 0], sizes = [1, 256], strides = [1, 1]} : vector<2x256xf32> to vector<1x256xf32>
    %34 = vector.broadcast %32 : vector<32x1xf32> to vector<32x256xf32>
    %35 = vector.broadcast %33 : vector<1x256xf32> to vector<32x256xf32>
    %36 = arith.mulf %34, %35 : vector<32x256xf32>
    %37 = arith.addf %31, %36 : vector<32x256xf32>
    %38 = math.tanh %37 : vector<32x256xf32>
    %c104 = arith.constant 104 : index
    %c0_10 = arith.constant 0 : index
    %39 = vector.load %arg3[%c104, %c0_10] : memref<144x128xf32, #tpu.memory_space<vmem>>, vector<32x128xf32>
    %40 = vector.extract_strided_slice %39 {offsets = [0, 0], sizes = [32, 32], strides = [1, 1]} : vector<32x128xf32> to vector<32x32xf32>
    %41 = vector.extract_strided_slice %39 {offsets = [0, 32], sizes = [32, 1], strides = [1, 1]} : vector<32x128xf32> to vector<32x1xf32>
    %cst_11 = arith.constant dense<0.000000e+00> : vector<32x256xf32>
    %42 = tpu.matmul %40, %38, %cst_11 {dimension_numbers = #tpu.dot_dimension_numbers<[1], [0], [0], [1], [0, 0, 1, 1], [], []>} : vector<32x32xf32>, vector<32x256xf32>, vector<32x256xf32> -> vector<32x256xf32>
    %43 = vector.broadcast %41 : vector<32x1xf32> to vector<32x256xf32>
    %44 = arith.addf %42, %43 : vector<32x256xf32>
    %45 = math.tanh %44 : vector<32x256xf32>
    %c136 = arith.constant 136 : index
    %c0_12 = arith.constant 0 : index
    %46 = vector.load %arg3[%c136, %c0_12] : memref<144x128xf32, #tpu.memory_space<vmem>>, vector<8x128xf32>
    %47 = vector.extract_strided_slice %46 {offsets = [0, 0], sizes = [8, 32], strides = [1, 1]} : vector<8x128xf32> to vector<8x32xf32>
    %48 = vector.extract_strided_slice %46 {offsets = [0, 32], sizes = [8, 1], strides = [1, 1]} : vector<8x128xf32> to vector<8x1xf32>
    %cst_13 = arith.constant dense<0.000000e+00> : vector<8x256xf32>
    %49 = tpu.matmul %47, %45, %cst_13 {dimension_numbers = #tpu.dot_dimension_numbers<[1], [0], [0], [1], [0, 0, 1, 1], [], []>} : vector<8x32xf32>, vector<32x256xf32>, vector<8x256xf32> -> vector<8x256xf32>
    %50 = vector.broadcast %48 : vector<8x1xf32> to vector<8x256xf32>
    %51 = arith.addf %49, %50 : vector<8x256xf32>
    %52 = arith.mulf %20, %51 : vector<8x256xf32>
    %cst_14 = arith.constant dense<0.000000e+00> : vector<256xf32>
    %53 = vector.multi_reduction <add>, %52, %cst_14 [0] : vector<8x256xf32> to vector<256xf32>
    %54 = vector.shape_cast %53 : vector<256xf32> to vector<1x256xf32>
    %c0_15 = arith.constant 0 : index
    %c0_16 = arith.constant 0 : index
    %55 = vector.load %arg4[%c0_15, %c0_16] : memref<1x256xf32, #tpu.memory_space<vmem>>, vector<1x256xf32>
    tpu.vector_store %arg4[%c0_15, %c0_16], %54 {strides = array<i32>} : memref<1x256xf32, #tpu.memory_space<vmem>>, vector<1x256xf32>,
    return
  }
  func.func @transform_0(%arg0: i32) -> (i32, i32) {
    %c0_i32 = arith.constant 0 : i32
    %c0_i32_0 = arith.constant 0 : i32
    return %c0_i32, %arg0 : i32, i32
  }
  func.func @transform_1(%arg0: i32) -> (i32, i32) {
    %c0_i32 = arith.constant 0 : i32
    %c0_i32_0 = arith.constant 0 : i32
    return %c0_i32, %arg0 : i32, i32
  }
  func.func @transform_2(%arg0: i32) -> (i32, i32) {
    %c0_i32 = arith.constant 0 : i32
    %c0_i32_0 = arith.constant 0 : i32
    %c0_i32_1 = arith.constant 0 : i32
    return %c0_i32, %c0_i32_0 : i32, i32
  }
  func.func @transform_3(%arg0: i32) -> (i32, i32) {
    %c0_i32 = arith.constant 0 : i32
    %c0_i32_0 = arith.constant 0 : i32
    return %c0_i32, %arg0 : i32, i32
  }
}

</mosaic_0001>

<bundles_post_ra>
// kernel: deeponet_forward.1
= control target key start
LH: loop header
LB: loop body
LE: loop exit
PB: predicated region body
PF: predicated region fallthrough
CT: control target
= control target key end

     0   :  { %s1232_s12 = smov 0   ;;  %s1234_s13 = smov 0   ;;  %s1430_s0 = inlined_call_operand.vmem [shape: f32[16,512], index: 0, kind: input, shape index: {}]   ;;  %s1431_s1 = inlined_call_operand.vmem [shape: f32[2,512], index: 1, kind: input, shape index: {}]   ;;  %s1432_s2 = inlined_call_operand.vmem [shape: f32[144,128], index: 2, kind: input, shape index: {}]   ;;  %s1433_s3 = inlined_call_operand.vmem [shape: f32[1,512], index: 3, kind: output, shape index: {}]  }
   0x1   :  { %s1236_s14 = smov 0  }
   0x2 LB: > { %s1009_s15 = sadd.s32 4294967295, %s1203_s14   ;;  %s1249_s16 = sadd.s32 1, %s1203_s14   ;;  %s1203_s14 = sphi %s1236_s14, %s1436_s14   ;;  %s1199_s13 = sphi %s1234_s13, %s1435_s13   ;;  %s1195_s12 = sphi %s1232_s12, %s1434_s12  }
   0x3   : > { %s17_s17 = ssub.s32 %s1203_s14, %s1249_s16  ;;  %s20_s18 = sadd.s32 1, %s1199_s13 }
   0x4   : > { %p18_p0 = scmp.eq.s32.totalorder %s17_s17, 0  ;;  %p27_p1 = scmp.ne.s32.totalorder %s1199_s13, %s1195_s12 }
   0x5   : > { %p28_p2 = scmp.eq.s32.totalorder %s1203_s14, 0  ;;  %p1012_p4 = scmp.ge.s32.totalorder %s1203_s14, 2 }
   0x6   : > { %s1258_s19 = scalar_select %p18_p0, %s1199_s13, %s20_s18  }
   0x7   : > { %p29_p3 = por %p28_p2, %p27_p1  ;;  %129 = sbr.rel (%p1012_p4) target bundleno = 21 (0x15), region = 20 }
   0xe   : > { %132 = sbr.rel (!%p29_p3) target bundleno = 21 (0x15), region = 24  ;;  %s134_s20 = sand.u32 (%p29_p3), 1, %s1199_s13  }
   0xf   : > { %s1037_s21 = sshll.u32 (%p29_p3), %s1203_s14, 4  ;;  %s1013_s22 = sshll.u32 (%p29_p3), %s134_s20, 5 }
  0x10   : > { %s139_s25 = scalar_lea.vmem (%p29_p3), %s1430_s0, %s1037_s21  ;;  %s136_s26 = scalar_lea.vmem (%p29_p3), [#allocation2], %s1013_s22 }
  0x11   : > { %v152_v0 = vld [vmem:[%s139_s25] sm:$0xff] (%p29_p3)  ;;  %v154_v1 = vld [vmem:[%s139_s25 + $0x8] sm:$0xff] (%p29_p3) }
  0x12   : > { %v156_v2 = vld [vmem:[%s139_s25 + $0x20] sm:$0xff] (%p29_p3)  ;;  %153 = vst [vmem:[%s136_s26] sm:$0xff] (%p29_p3), %v152_v0  ;;  %155 = vst [vmem:[%s136_s26 + $0x8] sm:$0xff] (%p29_p3), %v154_v1  ;;  %v158_v3 = vld [vmem:[%s139_s25 + $0x28] sm:$0xff] (%p29_p3) }
  0x13   : > { %157 = vst [vmem:[%s136_s26 + $0x10] sm:$0xff] (%p29_p3), %v156_v2  ;;  %159 = vst [vmem:[%s136_s26 + $0x18] sm:$0xff] (%p29_p3), %v158_v3 }
  0x15 PF: > { %p1016_p5 = scmp.ge.s32.totalorder %s1203_s14, 1  ;;  %p173_p6 = scmp.lt.s32.totalorder %s1203_s14, 3 }
  0x17   : > { %p174_p7 = pnand %p1016_p5, %p173_p6 }
  0x18   : > { %s180_s27 = sand.u32 (!%p174_p7), 1, %s1195_s12   ;;  %v1205_v4 = vmov (!%p174_p7), 0.0   ;;  %v223_v5 = vld [vmem:[%s1432_s2] sm:$0xff] (!%p174_p7)  ;;  %v225_v6 = vld [vmem:[%s1432_s2 + $0x10] sm:$0xff] (!%p174_p7)  ;;  %v1206_v7 = vmov (!%p174_p7), 16   ;;  %v226_v14 = vld [vmem:[%s1432_s2 + $0x18] sm:$0xff] (!%p174_p7)  ;;  %v588_v39 = vlaneseq (!%p174_p7) }
  0x19   : > { %177 = sbr.rel (%p174_p7) target bundleno = 774 (0x306), region = 51  ;;  %s1017_s28 = sshll.u32 (!%p174_p7), %s180_s27, 5  ;;  %320 = vmatprep.mubr.f32.mxu0 (!%p174_p7), %v1205_v4  ;;  %450 = vmatprep.mubr.f32.mxu1 (!%p174_p7), %v1205_v4  ;;  %vm247_vm0 = vcmask (!%p174_p7), 130048   ;;  %v224_v15 = vld [vmem:[%s1432_s2 + $0x8] sm:$0xff] (!%p174_p7)  ;;  %v564_v16 = vld [vmem:[%s1432_s2 + $0x50] sm:$0xff] (!%p174_p7)  ;;  %v1207_v18 = vmov (!%p174_p7), 0  }
  0x1a   : > { %1106 = vset.pattern.permute.xlu1 (!%p174_p7), %v1206_v7  ;;  %1105 = vset.pattern.permute.xlu0 (!%p174_p7), %v1206_v7  ;;  %s182_s6 = scalar_lea.vmem (!%p174_p7), [#allocation2], %s1017_s28  ;;  %v563_v17 = vld [vmem:[%s1432_s2 + $0x48] sm:$0xff] (!%p174_p7)  ;;  %v565_v19 = vld [vmem:[%s1432_s2 + $0x58] sm:$0xff] (!%p174_p7)  ;;  %v1208_v20 = vmov (!%p174_p7), 2   ;;  %v1209_v21 = vmov (!%p174_p7), 1   ;;  %v566_v22 = vld [vmem:[%s1432_s2 + $0x60] sm:$0xff] (!%p174_p7) }
  0x1b   : > { %v220_v8 = vld [vmem:[%s182_s6 + $0x8] sm:$0xff] (!%p174_p7)  ;;  %v222_v9 = vld [vmem:[%s182_s6 + $0x18] sm:$0xff] (!%p174_p7)  ;;  %v219_v10 = vld [vmem:[%s182_s6] sm:$0xff] (!%p174_p7)  ;;  %239 = vperm.xlu1 (!%p174_p7), %1106, %v225_v6   ;;  %229 = vperm.xlu0 (!%p174_p7), %1105, %v223_v5   ;;  %v1210_v25 = vmov (!%p174_p7), 32   ;;  %s1018_s22 = sshll.u32 (!%p174_p7), %s1009_s15, 1  ;;  %v1373_v41 = vshrl.u32 (!%p174_p7), %v588_v39, 7 }
  0x1c   : > { %v1038_v11 = vpack.c.bf16 (!%p174_p7), %v222_v9, %v220_v8  ;;  %v221_v12 = vld [vmem:[%s182_s6 + $0x10] sm:$0xff] (!%p174_p7)  ;;  %v1306_v23 = vld [vmem:[%s1432_s2 + $0x20] sm:$0xff] (!%p174_p7)  ;;  %v1311_v24 = vld [vmem:[%s1432_s2 + $0x28] sm:$0xff] (!%p174_p7)  ;;  %p209_p8 = scmp.lt.s32.totalorder (!%p174_p7), %s1018_s22, 3  ;;  %vm377_vm1 = vcmask (!%p174_p7), 261120   ;;  %vm938_vm2 = vcmp.lt.s32.totalorder (!%p174_p7), %v588_v39, 256 }
  0x1d   : > { %v1040_v13 = vpack.c.bf16 (!%p174_p7), %v221_v12, %v219_v10  ;;  %v1318_v26 = vld [vmem:[%s1432_s2 + $0x30] sm:$0xff] (!%p174_p7)  ;;  %v1323_v27 = vld [vmem:[%s1432_s2 + $0x38] sm:$0xff] (!%p174_p7)  ;;  %v1330_v28 = vld [vmem:[%s1432_s2 + $0x68] sm:$0xff] (!%p174_p7)  ;;  %v594_v43 = vsub.s32 (!%p174_p7), 2, %v1373_v41  ;;  %v660_v48 = vsub.s32 (!%p174_p7), 3, %v1373_v41  ;;  %v590_v50 = vsub.s32 (!%p174_p7), 0, %v1373_v41 }
  0x1e   : > { %1039 = vmatprep.subr.bf16.mxu0 (!%p174_p7), %v1038_v11  ;;  %v1335_v29 = vld [vmem:[%s1432_s2 + $0x70] sm:$0xff] (!%p174_p7)  ;;  %v1342_v30 = vld [vmem:[%s1432_s2 + $0x78] sm:$0xff] (!%p174_p7)  ;;  %v1347_v31 = vld [vmem:[%s1432_s2 + $0x80] sm:$0xff] (!%p174_p7)  ;;  %v656_v55 = vsub.s32 (!%p174_p7), 1, %v1373_v41 }
  0x1f   : > { %1041 = vmatpush1.bf16.msra.mxu0 (!%p174_p7), %v1040_v13  ;;  %244 = vperm.xlu1 (!%p174_p7), %1106, %v226_v14   ;;  %v1354_v32 = vld [vmem:[%s1432_s2 + $0x40] sm:$0xff] (!%p174_p7)  ;;  %v1359_v33 = vld [vmem:[%s1432_s2 + $0x88] sm:$0xff] (!%p174_p7) }
  0x20   : > { %234 = vperm.xlu0 %1105, %v224_v15   ;;  %s1438_s22 = smov (!%p209_p8, %s1018_s22), 3 }
  0x21   : > { %s1019_s23 = sshll.u32 %s1438_s22, 1  ;;  %s217_s27 = scalar_lea.vmem %s1433_s3, %s1438_s22 }
  0x22   : > { %1021 = vmatmul.mubr.msk.f32.vlgmr.msra.gmra.mrb[0].mxu0 %vm247_vm0, %v223_v5  ;;  %s212_s26 = scalar_lea.vmem %s1431_s1, %s1019_s23 }
  0x23   : > { %326 = vmatprep.mubr.f32.mxu0 %v1205_v4  ;;  %1108 = vset.pattern.permute.xlu1 %v1207_v18  ;;  %v562_v45 = vld [vmem:[%s212_s26] sm:$0xf] }
  0x24   : > { %574 = vperm.xlu1 %1108, %v564_v16   ;;  %1107 = vset.pattern.permute.xlu0 %v1207_v18  ;;  %v595_v47 = vrot.slane %v562_v45, %v594_v43  ;;  %v661_v52 = vrot.slane %v562_v45, %v660_v48  ;;  %v591_v54 = vrot.slane %v562_v45, %v590_v50 }
  0x25   : > { %569 = vperm.xlu0 %1107, %v563_v17   ;;  %v657_v62 = vrot.slane %v562_v45, %v656_v55 }
  0x26   : > { %1022 = vmatmul.mubr.msk.f32.gmra.mrb[2].mxu0 %vm247_vm0, %v224_v15  ;;  %v605_v51 = vrot.slane %v595_v47, %v590_v50  ;;  %v671_v58 = vrot.slane %v661_v52, %v656_v55  ;;  %v601_v59 = vrot.slane %v591_v54, %v590_v50 }
  0x27   : > { %332 = vmatprep.mubr.f32.mxu0 %v1205_v4  ;;  %v667_v12 = vrot.slane %v657_v62, %v656_v55 }
  0x28   : > { %1109 = vset.pattern.permute.xlu1 %v1208_v20 }
  0x29   : > { %615 = vperm.xlu1 %1109, %v563_v17   ;;  %579 = vperm.xlu0 %1107, %v565_v19  }
  0x2a   : > { %1023 = vmatmul.mubr.msk.f32.gmra.mrb[4].mxu0 %vm247_vm0, %v225_v6 }
  0x2b   : > { %338 = vmatprep.mubr.f32.mxu0 %v1205_v4 }
  0x2d   : > { %1110 = vset.pattern.permute.xlu1 %v1209_v21  ;;  %1111 = vset.pattern.permute.xlu0 %v1208_v20 }
  0x2e   : > { %1024 = vmatmul.mubr.msk.f32.gmra.mrb[6].mxu0 %vm247_vm0, %v226_v14  ;;  %639 = vperm.xlu1 %1110, %v563_v17  }
  0x2f   : > { %619 = vperm.xlu0 %1111, %v564_v16   ;;  %555 = vmatprep.mubr.f32.mxu0 %v1205_v4 }
  0x32   : > { %643 = vperm.xlu1 %1110, %v564_v16  }
  0x33   : > { %627 = vperm.xlu0 %1111, %v566_v22  }
  0x36   : > { %1112 = vset.pattern.permute.xlu1 %v1207_v18 }
  0x37   : > { %584 = vperm.xlu1 %1112, %v566_v22   ;;  %1115 = vset.pattern.permute.xlu0 %v1210_v25 }
  0x38   : > { %359 = vperm.xlu0 %1115, %v1306_v23  }
  0x3b   : > { %1113 = vset.pattern.permute.xlu1 %v1208_v20 }
  0x3c   : > { %623 = vperm.xlu1 %1113, %v565_v19   ;;  %374 = vperm.xlu0 %1115, %v1323_v27  }
  0x40   : > { %1114 = vset.pattern.permute.xlu1 %v1209_v21  ;;  %707 = vperm.xlu0 %1115, %v1335_v29  }
  0x41   : > { %647 = vperm.xlu1 %1114, %v565_v19  }
  0x44   : > { %717 = vperm.xlu0 %1115, %v1347_v31  }
  0x45   : > { %651 = vperm.xlu1 %1114, %v566_v22  }
  0x48   : > { %828 = vperm.xlu0 %1115, %v1359_v33  }
  0x49   : > { %1116 = vset.pattern.permute.xlu1 %v1210_v25 }
  0x4a   : > { %364 = vperm.xlu1 %1116, %v1311_v24  }
  0x4e   : > { %369 = vperm.xlu1 %1116, %v1318_v26  }
  0x52   : > { %702 = vperm.xlu1 %1116, %v1330_v28  }
  0x56   : > { %712 = vperm.xlu1 %1116, %v1342_v30  }
  0x5a   : > { %486 = vperm.xlu1 %1116, %v1354_v32  }
  0x9a   : > { %v1363_v34 = vpop.permute.xlu1 %239  ;;  %v230_v38 = vpop.permute.xlu0 %229 }
  0x9e   : > { %v1365_v35 = vpop.permute.xlu1 %244 }
  0x9f   : > { %v235_v42 = vpop.permute.xlu0 %234 }
  0xa3   : > { %v575_v36 = vpop.permute.xlu1 %574 }
  0xa4   : > { %v570_v46 = vpop.permute.xlu0 %569  ;;  %v609_v60 = vmul.f32 %v605_v51, %v575_v36  ;;  %v608_v11 = vmul.f32 %v601_v59, %v575_v36 }
  0xa5   : > { %v607_v57 = vmul.f32 %v605_v51, %v570_v46  ;;  %v606_v7 = vmul.f32 %v601_v59, %v570_v46 }
  0xa8   : > { %v616_v37 = vpop.permute.xlu1 %615  ;;  %v580_v53 = vpop.permute.xlu0 %579 }
  0xa9   : > { %v631_v3 = vadd.f32 %v616_v37, %v607_v57  ;;  %v611_v17 = vmul.f32 %v605_v51, %v580_v53  ;;  %v630_v18 = vadd.f32 %v616_v37, %v606_v7  ;;  %v610_v47 = vmul.f32 %v601_v59, %v580_v53 }
  0xad   : > { %v640_v40 = vpop.permute.xlu1 %639 }
  0xae   : > { %v620_v63 = vpop.permute.xlu0 %619  ;;  %v673_v5 = vmul.f32 %v671_v58, %v640_v40  ;;  %v672_v25 = vmul.f32 %v667_v12, %v640_v40 }
  0xaf   : > { %v633_v9 = vadd.f32 %v620_v63, %v609_v60  ;;  %v632_v43 = vadd.f32 %v620_v63, %v608_v11 }
  0xb0   : > { %v681_v16 = vadd.f32 %v673_v5, %v631_v3  ;;  %v680_v55 = vadd.f32 %v672_v25, %v630_v18 }
  0xb1   : > { %v644_v44 = vpop.permute.xlu1 %643 }
  0xb2   : > { %v675_v8 = vmul.f32 %v671_v58, %v644_v44  ;;  %v628_v21 = vpop.permute.xlu0 %627 }
  0xb4   : > { %v683_v19 = vadd.f32 %v675_v8, %v633_v9 }
  0xb6   : > { %v585_v49 = vpop.permute.xlu1 %584 }
  0xb7   : > { %v613_v20 = vmul.f32 %v605_v51, %v585_v49 }
  0xb9   : > { %v637_v51 = vadd.f32 %v628_v21, %v613_v20 }
  0xbb   : > { %v624_v56 = vpop.permute.xlu1 %623 }
  0xbc   : > { %v635_v50 = vadd.f32 %v624_v56, %v611_v17  ;;  %v634_v60 = vadd.f32 %v624_v56, %v610_v47 }
  0xc0   : > { %v648_v6 = vpop.permute.xlu1 %647 }
  0xc1   : > { %v677_v52 = vmul.f32 %v671_v58, %v648_v6 }
  0xc3   : > { %v685_v62 = vadd.f32 %v677_v52, %v635_v50 }
  0xc4   : > { %v652_v45 = vpop.permute.xlu1 %651 }
  0xc5   : > { %v679_v37 = vmul.f32 %v671_v58, %v652_v45 }
  0xc7   : > { %v687_v58 = vadd.f32 %v679_v37, %v637_v51 }
  0xf5   : > { %v322_v61 = vpop.f32.mrb[0].mxu0 }
  0xf6   : > { %v323_v0 = vadd.f32 %v322_v61, %v230_v38  ;;  %v324_v1 = vpop.f32.mrb[1].mxu0  ;;  %v676_v61 = vmul.f32 %v667_v12, %v648_v6 }
  0xf7   : > { %v325_v2 = vadd.f32 %v324_v1, %v230_v38  ;;  %v674_v38 = vmul.f32 %v667_v12, %v644_v44 }
  0xf8   : > { %1117 = vtanh.f32 %v323_v0 }
  0xf9   : > { %v328_v10 = vpop.f32.mrb[2].mxu0  ;;  %1119 = vtanh.f32 %v325_v2  ;;  %v682_v57 = vadd.f32 %v674_v38, %v632_v43  ;;  %v684_v2 = vadd.f32 %v676_v61, %v634_v60 }
  0xfa   : > { %v329_v13 = vadd.f32 %v328_v10, %v235_v42  ;;  %v330_v14 = vpop.f32.mrb[3].mxu0 }
  0xfb   : > { %v331_v15 = vadd.f32 %v330_v14, %v235_v42  ;;  %v612_v42 = vmul.f32 %v601_v59, %v585_v49  ;;  %v678_v49 = vmul.f32 %v667_v12, %v652_v45 }
  0xfc   : > { %1121 = vtanh.f32 %v329_v13 }
  0xfd   : > { %1123 = vtanh.f32 %v331_v15  ;;  %v334_v22 = vpop.f32.mrb[4].mxu0  ;;  %v636_v59 = vadd.f32 %v628_v21, %v612_v42 }
  0xfe   : > { %v335_v36 = vadd.f32 %v334_v22, %v1363_v34  ;;  %v336_v46 = vpop.f32.mrb[5].mxu0  ;;  %1125 = vtanh.f32 %v681_v16 }
  0xff   : > { %v337_v48 = vadd.f32 %v336_v46, %v1363_v34  ;;  %1127 = vtanh.f32 %v683_v19  ;;  %v686_v56 = vadd.f32 %v678_v49, %v636_v59 }
 0x100   : > { %1129 = vtanh.f32 %v335_v36 }
 0x101   : > { %v340_v54 = vpop.f32.mrb[6].mxu0  ;;  %1131 = vtanh.f32 %v337_v48 }
 0x102   : > { %v341_v40 = vadd.f32 %v340_v54, %v1365_v35  ;;  %v342_v44 = vpop.f32.mrb[7].mxu0  ;;  %v1118_v34 = vpop.eup %1117 }
 0x103   : > { %v343_v53 = vadd.f32 %v342_v44, %v1365_v35  ;;  %v1120_v63 = vpop.eup %1119 }
 0x104   : > { %1133 = vtanh.f32 %v341_v40 }
 0x105   : > { %1135 = vtanh.f32 %v343_v53 }
 0x106   : > { %v1122_v0 = vpop.eup %1121  ;;  %1137 = vtanh.f32 %v680_v55 }
 0x107   : > { %v1124_v1 = vpop.eup %1123  ;;  %1139 = vtanh.f32 %v682_v57  ;;  %v1044_v3 = vpack.c.bf16 %v1122_v0, %v1118_v34 }
 0x108   : > { %1141 = vtanh.f32 %v685_v62  ;;  %v1042_v5 = vpack.c.bf16 %v1124_v1, %v1120_v63  ;;  %v1126_v6 = vpop.eup %1125 }
 0x109   : > { %1143 = vtanh.f32 %v687_v58  ;;  %v1128_v35 = vpop.eup %1127 }
 0x10a   : > { %1043 = vmatprep.subr.bf16.mxu1 %v1042_v5  ;;  %1145 = vtanh.f32 %v684_v2  ;;  %v1130_v7 = vpop.eup %1129  ;;  %v1058_v16 = vpack.c.bf16 %v1128_v35, %v1126_v6 }
 0x10b   : > { %1045 = vmatpush1.bf16.msra.mxu1 %v1044_v3  ;;  %1147 = vtanh.f32 %v686_v56  ;;  %v1132_v8 = vpop.eup %1131 }
 0x10e   : > { %v1134_v9 = vpop.eup %1133 }
 0x10f   : > { %v1136_v10 = vpop.eup %1135  ;;  %v1048_v11 = vpack.c.bf16 %v1134_v9, %v1130_v7 }
 0x110   : > { %v1138_v12 = vpop.eup %1137  ;;  %v1046_v13 = vpack.c.bf16 %v1136_v10, %v1132_v8 }
 0x111   : > { %v1140_v14 = vpop.eup %1139 }
 0x112   : > { %v1142_v15 = vpop.eup %1141  ;;  %1047 = vmatprep.subr.bf16.mxu1 %v1046_v13  ;;  %v1060_v19 = vpack.c.bf16 %v1140_v14, %v1138_v12 }
 0x113   : > { %v1144_v17 = vpop.eup %1143  ;;  %1049 = vmatpush1.bf16.msra.mxu1 %v1048_v11 }
 0x114   : > { %1059 = vmatprep.subr.bf16.mxu1 %v1058_v16  ;;  %v1146_v18 = vpop.eup %1145  ;;  %v1062_v21 = vpack.c.bf16 %v1144_v17, %v1142_v15 }
 0x115   : > { %v1148_v20 = vpop.eup %1147 }
 0x116   : > { %1025 = vmatmul.mubr.msk.f32.vlgmr.msra.gmra.mrb[0].mxu1 %vm377_vm1, %v1306_v23  ;;  %v1064_v22 = vpack.c.bf16 %v1148_v20, %v1146_v18  ;;  %v360_v23 = vpop.permute.xlu0 %359 }
 0x117   : > { %1061 = vmatpush1.bf16.msra.mxu1 %v1060_v19  ;;  %456 = vmatprep.mubr.f32.mxu1 %v1205_v4 }
 0x118   : > { %1063 = vmatprep.subr.bf16.mxu1 %v1062_v21 }
 0x11a   : > { %1026 = vmatmul.mubr.msk.f32.gmra.mrb[2].mxu1 %vm377_vm1, %v1311_v24 }
 0x11b   : > { %1065 = vmatpush1.bf16.msra.mxu1 %v1064_v22  ;;  %462 = vmatprep.mubr.f32.mxu1 %v1205_v4 }
 0x11e   : > { %1027 = vmatmul.mubr.msk.f32.gmra.mrb[4].mxu1 %vm377_vm1, %v1318_v26 }
 0x11f   : > { %468 = vmatprep.mubr.f32.mxu1 %v1205_v4 }
 0x122   : > { %1028 = vmatmul.mubr.msk.f32.gmra.mrb[6].mxu1 %vm377_vm1, %v1323_v27 }
 0x123   : > { %792 = vmatprep.mubr.f32.mxu1 %v1205_v4 }
 0x126   : > { %1030 = vmatmul.mubr.msk.f32.vlgmr.msra.gmra.mrb[8].mxu1 %vm377_vm1, %v1330_v28  ;;  %v365_v28 = vpop.permute.xlu1 %364 }
 0x127   : > { %798 = vmatprep.mubr.f32.mxu1 %v1205_v4 }
 0x12a   : > { %1031 = vmatmul.mubr.msk.f32.gmra.mrb[10].mxu1 %vm377_vm1, %v1335_v29  ;;  %v370_v36 = vpop.permute.xlu1 %369 }
 0x12b   : > { %804 = vmatprep.mubr.f32.mxu1 %v1205_v4 }
 0x12e   : > { %1032 = vmatmul.mubr.msk.f32.gmra.mrb[12].mxu1 %vm377_vm1, %v1342_v30  ;;  %v703_v55 = vpop.permute.xlu1 %702 }
 0x12f   : > { %810 = vmatprep.mubr.f32.mxu1 %v1205_v4 }
 0x132   : > { %1033 = vmatmul.mubr.msk.f32.gmra.mrb[14].mxu1 %vm377_vm1, %v1347_v31  ;;  %v375_v31 = vpop.permute.xlu0 %374  ;;  %v713_v3 = vpop.permute.xlu1 %712 }
 0x136   : > { %v708_v49 = vpop.permute.xlu0 %707 }
 0x13a   : > { %v718_v11 = vpop.permute.xlu0 %717 }
 0x1e9   : > { %v452_v24 = vpop.f32.mrb[0].mxu1 }
 0x1ea   : > { %v453_v26 = vadd.f32 %v452_v24, %v360_v23  ;;  %v454_v27 = vpop.f32.mrb[1].mxu1 }
 0x1eb   : > { %v455_v25 = vadd.f32 %v454_v27, %v360_v23 }
 0x1ec   : > { %1149 = vtanh.f32 %v453_v26 }
 0x1ed   : > { %v458_v38 = vpop.f32.mrb[2].mxu1  ;;  %1151 = vtanh.f32 %v455_v25 }
 0x1ee   : > { %v459_v43 = vadd.f32 %v458_v38, %v365_v28  ;;  %v460_v29 = vpop.f32.mrb[3].mxu1  ;;  %v487_v38 = vpop.permute.xlu1 %486 }
 0x1ef   : > { %v461_v45 = vadd.f32 %v460_v29, %v365_v28 }
 0x1f0   : > { %1153 = vtanh.f32 %v459_v43  ;;  %v829_v43 = vpop.permute.xlu0 %828 }
 0x1f1   : > { %1155 = vtanh.f32 %v461_v45  ;;  %v464_v30 = vpop.f32.mrb[4].mxu1 }
 0x1f2   : > { %v465_v46 = vadd.f32 %v464_v30, %v370_v36  ;;  %v466_v47 = vpop.f32.mrb[5].mxu1 }
 0x1f3   : > { %v467_v48 = vadd.f32 %v466_v47, %v370_v36 }
 0x1f4   : > { %1157 = vtanh.f32 %v465_v46 }
 0x1f5   : > { %v470_v42 = vpop.f32.mrb[6].mxu1  ;;  %1159 = vtanh.f32 %v467_v48 }
 0x1f6   : > { %v471_v50 = vadd.f32 %v470_v42, %v375_v31  ;;  %v472_v52 = vpop.f32.mrb[7].mxu1  ;;  %v1150_v51 = vpop.eup %1149 }
 0x1f7   : > { %v473_v37 = vadd.f32 %v472_v52, %v375_v31  ;;  %v1152_v54 = vpop.eup %1151 }
 0x1f8   : > { %1161 = vtanh.f32 %v471_v50 }
 0x1f9   : > { %1163 = vtanh.f32 %v473_v37  ;;  %v794_v57 = vpop.f32.mrb[8].mxu1  ;;  %v1211_v37 = vmov 1966171168  }
 0x1fa   : > { %v1154_v40 = vpop.eup %1153  ;;  %v795_v44 = vadd.f32 %v794_v57, %v703_v55  ;;  %v796_v60 = vpop.f32.mrb[9].mxu1 }
 0x1fb   : > { %v1156_v61 = vpop.eup %1155  ;;  %v797_v53 = vadd.f32 %v796_v60, %v703_v55  ;;  %v1052_v34 = vpack.c.bf16 %v1154_v40, %v1150_v51  ;;  %v922_v51 = vunpack.c.l.s4 %v1211_v37 }
 0x1fc   : > { %v1050_v62 = vpack.c.bf16 %v1156_v61, %v1152_v54  ;;  %1165 = vtanh.f32 %v795_v44 }
 0x1fd   : > { %v800_v59 = vpop.f32.mrb[10].mxu1  ;;  %1167 = vtanh.f32 %v797_v53  ;;  %v923_v40 = vunpack.c.0.s8 %v922_v51 }
 0x1fe   : > { %v801_v63 = vadd.f32 %v800_v59, %v708_v49  ;;  %1051 = vmatprep.subr.bf16.mxu0 %v1050_v62  ;;  %v802_v58 = vpop.f32.mrb[11].mxu1  ;;  %v1158_v1 = vpop.eup %1157 }
 0x1ff   : > { %v803_v0 = vadd.f32 %v802_v58, %v708_v49  ;;  %1053 = vmatpush1.bf16.msra.mxu0 %v1052_v34  ;;  %v1160_v2 = vpop.eup %1159  ;;  %v926_v34 = vsub.s32 %v923_v40, %v1373_v41 }
 0x200   : > { %1169 = vtanh.f32 %v801_v63 }
 0x201   : > { %1171 = vtanh.f32 %v803_v0  ;;  %v806_v56 = vpop.f32.mrb[12].mxu1 }
 0x202   : > { %v1162_v5 = vpop.eup %1161  ;;  %v807_v6 = vadd.f32 %v806_v56, %v713_v3  ;;  %v808_v35 = vpop.f32.mrb[13].mxu1 }
 0x203   : > { %v1164_v7 = vpop.eup %1163  ;;  %v809_v8 = vadd.f32 %v808_v35, %v713_v3  ;;  %v1056_v9 = vpack.c.bf16 %v1162_v5, %v1158_v1 }
 0x204   : > { %v1054_v10 = vpack.c.bf16 %v1164_v7, %v1160_v2  ;;  %1173 = vtanh.f32 %v807_v6 }
 0x205   : > { %v812_v12 = vpop.f32.mrb[14].mxu1  ;;  %1175 = vtanh.f32 %v809_v8 }
 0x206   : > { %v813_v13 = vadd.f32 %v812_v12, %v718_v11  ;;  %1055 = vmatprep.subr.bf16.mxu0 %v1054_v10  ;;  %v814_v14 = vpop.f32.mrb[15].mxu1  ;;  %v1166_v16 = vpop.eup %1165 }
 0x207   : > { %v815_v15 = vadd.f32 %v814_v14, %v718_v11  ;;  %1057 = vmatpush1.bf16.msra.mxu0 %v1056_v9  ;;  %v1168_v17 = vpop.eup %1167 }
 0x208   : > { %1177 = vtanh.f32 %v813_v13 }
 0x209   : > { %1179 = vtanh.f32 %v815_v15 }
 0x20a   : > { %v1170_v18 = vpop.eup %1169  ;;  %1029 = vmatmul.mubr.msk.f32.vlgmr.msra.gmra.mrb[8].mxu0 %vm377_vm1, %v1354_v32 }
 0x20b   : > { %v1172_v19 = vpop.eup %1171  ;;  %v1068_v20 = vpack.c.bf16 %v1170_v18, %v1166_v16  ;;  %897 = vmatprep.mubr.f32.mxu0 %v1205_v4 }
 0x20c   : > { %v1066_v21 = vpack.c.bf16 %v1172_v19, %v1168_v17 }
 0x20e   : > { %1067 = vmatprep.subr.bf16.mxu0 %v1066_v21  ;;  %v1174_v22 = vpop.eup %1173 }
 0x20f   : > { %1069 = vmatpush1.bf16.msra.mxu0 %v1068_v20  ;;  %v1176_v23 = vpop.eup %1175 }
 0x212   : > { %v1178_v24 = vpop.eup %1177 }
 0x213   : > { %v1180_v26 = vpop.eup %1179  ;;  %v1072_v27 = vpack.c.bf16 %v1178_v24, %v1174_v22 }
 0x214   : > { %v1070_v28 = vpack.c.bf16 %v1180_v26, %v1176_v23 }
 0x216   : > { %1071 = vmatprep.subr.bf16.mxu0 %v1070_v28 }
 0x217   : > { %1073 = vmatpush1.bf16.msra.mxu0 %v1072_v27 }
 0x21a   : > { %1034 = vmatmul.mubr.msk.f32.vlgmr.msra.gmra.mrb[10].mxu0 %vm377_vm1, %v1359_v33 }
 0x2dd   : > { %v557_v25 = vpop.f32.mrb[8].mxu0 }
 0x2de   : > { %v559_v32 = vpop.f32.mrb[9].mxu0  ;;  %v558_v4 = vadd.f32 %v557_v25, %v487_v38 }
 0x2df   : > { %v560_v30 = vadd.f32 %v559_v32, %v487_v38 }
 0x2ed   : > { %v899_v29 = vpop.f32.mrb[10].mxu0 }
 0x2ee   : > { %v900_v45 = vadd.f32 %v899_v29, %v829_v43  ;;  %v901_v36 = vpop.f32.mrb[11].mxu0 }
 0x2ef   : > { %v902_v46 = vadd.f32 %v901_v36, %v829_v43 }
 0x2f0   : > { %v904_v47 = vmul.f32 %v900_v45, %v558_v4 }
 0x2f1   : > { %v905_v48 = vmul.f32 %v902_v46, %v560_v30 }
 0x2f2   : > { %v906_v31 = vrot.slane %v904_v47, 4 }
 0x2f3   : > { %v912_v42 = vrot.slane %v905_v48, 4 }
 0x2f4   : > { %v907_v50 = vadd.f32 %v906_v31, %v904_v47 }
 0x2f5   : > { %v913_v52 = vadd.f32 %v912_v42, %v905_v48 }
 0x2f6   : > { %v908_v33 = vrot.slane %v907_v50, 2 }
 0x2f7   : > { %v914_v54 = vrot.slane %v913_v52, 2 }
 0x2f8   : > { %v909_v55 = vadd.f32 %v908_v33, %v907_v50 }
 0x2f9   : > { %v915_v57 = vadd.f32 %v914_v54, %v913_v52 }
 0x2fa   : > { %v910_v44 = vrot.slane %v909_v55, 1 }
 0x2fb   : > { %v916_v60 = vrot.slane %v915_v57, 1 }
 0x2fc   : > { %v911_v61 = vadd.f32 %v910_v44, %v909_v55 }
 0x2fd   : > { %v917_v53 = vadd.f32 %v916_v60, %v915_v57 }
 0x2ff   : > { %v920_v62 = vcombine.low %v911_v61, %v917_v53 }
 0x301   : > { %v927_v49 = vrot.slane %v920_v62, %v926_v34 }
 0x303   : > { %v934_v59 = vrot.slane %v927_v49, %v926_v34 }
 0x305   : > { %940 = vst.msk [vmem:[%s217_s27] sm:$0x3] %vm938_vm2, %v934_v59 }
 0x306 PF: > { %p10_p9 = scmp.ge.s32.totalorder %s1249_s16, 4   ;;  %s1434_s12 = smov %s1199_s13 }
 0x307   : > { %s1435_s13 = smov %s1258_s19  ;;  %s1436_s14 = smov %s1249_s16 }
 0x308   :  { %12 = sbr.rel (!%p10_p9) target bundleno = 2 (0x2), region = 93 }

</bundles_post_ra>
